<compile_context>
chip_gen: v6e
topology: v6e:2x2x1
jax: 0.10.0
libtpu: 0.0.40
codegen_flags: <defaults>
</compile_context>

<pallas_src>
import functools

import jax
import jax.numpy as jnp
from jax.experimental import pallas as pl
from jax.experimental.pallas import tpu as pltpu


def _cdiv(a, b):
    return -(-a // b)


def _round_up(v, m):
    return ((v + m - 1) // m) * m


def _has_bf16_vpu():
    """True on chips with a native bf16 VPU (v6e / v7x); conservative otherwise."""
    try:
        kind = jax.devices()[0].device_kind.lower()
    except Exception:  # pragma: no cover - defensive
        return False
    return any(tag in kind for tag in ("v6", "v7", "7x", "trillium", "ironwood"))


def _scorenet_kernel(x_ref, w1_ref, b1_ref, w2_ref, b2_ref, w3_ref, b3_ref,
                     o_ref, *, bf16_elementwise):
    x = x_ref[...]                       # (TB, D) f32
    w1 = w1_ref[...]                     # (D, H)  f32

    # fc1: K = input_dim is tiny (2) -> VPU broadcast-FMAs, not an MXU matmul.
    h = b1_ref[...]                      # (1, H) broadcasts up to (TB, H)
    for k in range(x.shape[1]):          # static, unrolled (input_dim terms)
        h = h + x[:, k:k + 1] * w1[k:k + 1, :]
    h = jnp.maximum(h, 0.0)              # ReLU in f32

    # fc2: the dominant matmul -> bf16 MXU inputs, f32 accumulation.
    h = jnp.dot(h.astype(jnp.bfloat16), w2_ref[...],
                preferred_element_type=jnp.float32)       # (TB, H) f32

    # Fold the batch rows so the final store is lane-dense:
    # (TB, H) -> (TB/128, 128, H).  Tile-aligned fold of the sublane dim -> free.
    nb = o_ref.shape[1]
    hdim = h.shape[-1]
    h = h.reshape(nb, 128, hdim)

    b2 = b2_ref[...]                     # (1, H)
    w3 = w3_ref[...]                     # (1, H)
    if bf16_elementwise:
        # v6e / v7x: native bf16 VPU -> halve VPU op count & vreg footprint.
        hb = jnp.maximum(h.astype(jnp.bfloat16) + b2.astype(jnp.bfloat16), 0.0)
        s = jnp.sum(hb * w3.astype(jnp.bfloat16), axis=-1, dtype=jnp.float32)
    else:
        hf = jnp.maximum(h + b2, 0.0)    # bias + ReLU in f32 (v5e: no bf16 VPU)
        s = jnp.sum(hf * w3, axis=-1)    # (TB/128, 128) f32 lane reduction

    # Lane-dense store: (1, TB/128, 128) block, full-width vst.
    o_ref[...] = (s + b3_ref[0, 0]).astype(o_ref.dtype).reshape(o_ref.shape)


def scorenet_forward(x, params, *, block_batch=4096, bf16_elementwise=None):
    """x: [B, input_dim] float32 -> [B, 1] float32."""
    w1, b1, w2, b2, w3, b3 = params
    B, D = x.shape
    H = w1.shape[1]

    if bf16_elementwise is None:
        bf16_elementwise = _has_bf16_vpu()

    # One-time wrapper-side prep: bf16 copy of the big weight, row-layout w3.
    w2_bf = w2.astype(jnp.bfloat16)      # fc2 weight fed to the MXU in bf16
    w3_row = w3.reshape(1, H)            # (H,1) -> (1,H): avoids in-kernel relayout

    # ---- batch tile selection -------------------------------------------------
    # Multiple of 128 (needed for the lane-dense output layout) and, when the
    # batch is large enough, an even grid of >= 2 steps so v7x's two
    # TensorCores both get work.  No explicit padding of x: the last tile may
    # be ragged; its garbage rows only produce discarded output rows.
    n_target = max(1, _cdiv(B, block_batch))
    if B >= 256:
        n_target = max(2, n_target)
        if n_target % 2:
            n_target += 1
    tb = max(128, _round_up(_cdiv(B, n_target), 128))
    n_tiles = _cdiv(B, tb)

    # ---- scoped-VMEM budget ---------------------------------------------------
    # The (tb, D) x block is lane-padded to 128 lanes in VMEM, so at large tb it
    # dominates VMEM use; size the limit explicitly (v5e default is only 16 MiB).
    d_lanes = max(_round_up(D, 128), 128)
    h_lanes = max(_round_up(H, 128), 128)
    x_buf = 2 * tb * d_lanes * 4                       # double-buffered x tile
    out_buf = 2 * tb * 4                               # double-buffered scores
    wgt_buf = 2 * (d_lanes * h_lanes * 4 + 3 * 8 * h_lanes * 4 + 8 * 128 * 4
                   + h_lanes * h_lanes * 2)            # resident f32 + bf16 weights
    act_buf = 4 * tb * h_lanes * 4                     # hidden activations / casts
    vmem_limit = int(min(64 << 20,
                         max(32 << 20, x_buf + out_buf + wgt_buf + act_buf + (8 << 20))))

    # Advisory cost hint for the XLA scheduler.
    flops = 2 * B * H * (D + H + 1)
    bytes_accessed = B * (4 * D + 4) + (D * H + 3 * H + 1) * 4 + H * H * 2
    cost = pl.CostEstimate(flops=flops, transcendentals=0,
                           bytes_accessed=bytes_accessed)

    kernel = functools.partial(_scorenet_kernel, bf16_elementwise=bf16_elementwise)

    out = pl.pallas_call(
        kernel,
        out_shape=jax.ShapeDtypeStruct((n_tiles, tb // 128, 128), jnp.float32),
        grid=(n_tiles,),
        in_specs=[
            pl.BlockSpec((tb, D), lambda i: (i, 0)),   # x: streamed per batch tile
            pl.BlockSpec((D, H), lambda i: (0, 0)),    # w1: resident
            pl.BlockSpec((1, H), lambda i: (0, 0)),    # b1: resident
            pl.BlockSpec((H, H), lambda i: (0, 0)),    # w2 (bf16): resident
            pl.BlockSpec((1, H), lambda i: (0, 0)),    # b2: resident
            pl.BlockSpec((1, H), lambda i: (0, 0)),    # w3 row: resident
            pl.BlockSpec((1, 1), lambda i: (0, 0)),    # b3: resident
        ],
        out_specs=pl.BlockSpec((1, tb // 128, 128), lambda i: (i, 0, 0)),
        compiler_params=pltpu.CompilerParams(
            dimension_semantics=("parallel",),
            vmem_limit_bytes=vmem_limit,
        ),
        cost_estimate=cost,
    )(x, w1, b1, w2_bf, b2, w3_row, b3)

    # (n_tiles, tb/128, 128) row-major == (n_tiles*tb, 1): reshape is free,
    # slice off the (discarded) rows past B.
    return out.reshape(-1)[:B].reshape(B, 1)


def init_scorenet_params(key, input_dim=2, hidden_dim=128):
    """Mimics torch.nn.Linear default init (uniform +/- 1/sqrt(fan_in)).

    Weights are stored as [in, out] (PyTorch's W.T) so the kernel computes
    x @ W + b; biases are [1, out] for clean broadcasting.
    """
    ks = jax.random.split(key, 6)

    def lin(kw, kb, fan_in, fan_out):
        bound = 1.0 / jnp.sqrt(jnp.float32(fan_in))
        w = jax.random.uniform(kw, (fan_in, fan_out), jnp.float32, -bound, bound)
        b = jax.random.uniform(kb, (1, fan_out), jnp.float32, -bound, bound)
        return w, b

    w1, b1 = lin(ks[0], ks[1], input_dim, hidden_dim)
    w2, b2 = lin(ks[2], ks[3], hidden_dim, hidden_dim)
    w3, b3 = lin(ks[4], ks[5], hidden_dim, 1)
    return (w1, b1, w2, b2, w3, b3)


def scorenet_ref(x, params, *, match_kernel=False, bf16_elementwise=False):
    """Pure-JAX reference. match_kernel=True mirrors the kernel's mixed precision."""
    w1, b1, w2, b2, w3, b3 = params
    hp = jax.lax.Precision.HIGHEST
    h = jnp.maximum(jnp.dot(x, w1, precision=hp) + b1, 0.0)
    if not match_kernel:
        h = jnp.dot(h, w2, precision=hp)
        h = jnp.maximum(h + b2, 0.0)
        return jnp.dot(h, w3, precision=hp) + b3
    h = jnp.dot(h.astype(jnp.bfloat16), w2.astype(jnp.bfloat16),
                preferred_element_type=jnp.float32)
    w3_row = w3.reshape(1, -1)
    if bf16_elementwise:
        hb = jnp.maximum(h.astype(jnp.bfloat16) + b2.astype(jnp.bfloat16), 0.0)
        s = jnp.sum(hb * w3_row.astype(jnp.bfloat16), axis=-1, dtype=jnp.float32)
    else:
        hf = jnp.maximum(h + b2, 0.0)
        s = jnp.sum(hf * w3_row, axis=-1)
    return s[:, None] + b3.reshape(1, 1)


if __name__ == "__main__":
    key = jax.random.PRNGKey(0)
    k_param, k_x = jax.random.split(key)

    # Small shapes consistent with the module (hidden_dim=128 = one vreg lane
    # dim; input_dim=2 as in the spec).
    input_dim, hidden_dim, batch = 2, 128, 16
    params = init_scorenet_params(k_param, input_dim=input_dim, hidden_dim=hidden_dim)
    x = jax.random.normal(k_x, (batch, input_dim), dtype=jnp.float32)

    use_bf16_vpu = _has_bf16_vpu()
    out = scorenet_forward(x, params, bf16_elementwise=use_bf16_vpu)
    out = jax.block_until_ready(out)
    assert out.shape == (batch, 1), out.shape

    # Tight check vs a reference matching the kernel's mixed precision.
    ref_matched = scorenet_ref(x, params, match_kernel=True,
                               bf16_elementwise=use_bf16_vpu)
    assert jnp.allclose(out, ref_matched, atol=2e-3, rtol=2e-3), \
        "mismatch vs matched reference"

    # Sanity check vs the full-f32 reference (bf16 fc2 introduces ~1e-2 error).
    ref_f32 = scorenet_ref(x, params)
    assert jnp.allclose(out, ref_f32, atol=1e-1, rtol=1e-1), \
        "mismatch vs f32 reference"

    print("KERNEL_OK")
</pallas_src>

<mosaic_0001>
module attributes {stable_mosaic.version = 11 : i64} {
  func.func @_scorenet_kernel(%arg0: i32, %arg1: memref<128x2xf32, #tpu.memory_space<vmem>>, %arg2: memref<2x128xf32, #tpu.memory_space<vmem>>, %arg3: memref<1x128xf32, #tpu.memory_space<vmem>>, %arg4: memref<128x128xbf16, #tpu.memory_space<vmem>>, %arg5: memref<1x128xf32, #tpu.memory_space<vmem>>, %arg6: memref<1x128xf32, #tpu.memory_space<vmem>>, %arg7: memref<1x1xf32, #tpu.memory_space<vmem>>, %arg8: memref<1x1x128xf32, #tpu.memory_space<vmem>>) attributes {dimension_semantics = [#tpu.dimension_semantics<parallel>], iteration_bounds = array<i64: 1>, scalar_prefetch = 0 : i64, scratch_operands = 0 : i64, tpu.core_type = #tpu.core_type<tc>, window_params = [{transform_indices = @transform_0, window_bounds = array<i64: 128, 2>}, {pipeline_mode = #tpu.pipeline_mode<synchronous>, transform_indices = @transform_1, window_bounds = array<i64: 2, 128>}, {pipeline_mode = #tpu.pipeline_mode<synchronous>, transform_indices = @transform_2, window_bounds = array<i64: 1, 128>}, {pipeline_mode = #tpu.pipeline_mode<synchronous>, transform_indices = @transform_3, window_bounds = array<i64: 128, 128>}, {pipeline_mode = #tpu.pipeline_mode<synchronous>, transform_indices = @transform_4, window_bounds = array<i64: 1, 128>}, {pipeline_mode = #tpu.pipeline_mode<synchronous>, transform_indices = @transform_5, window_bounds = array<i64: 1, 128>}, {pipeline_mode = #tpu.pipeline_mode<synchronous>, transform_indices = @transform_6, window_bounds = array<i64: 1, 1>}, {transform_indices = @transform_7, window_bounds = array<i64: 1, 1, 128>}]} {
    %c0 = arith.constant 0 : index
    %c0_0 = arith.constant 0 : index
    %0 = vector.load %arg1[%c0, %c0_0] : memref<128x2xf32, #tpu.memory_space<vmem>>, vector<128x2xf32>
    %c0_1 = arith.constant 0 : index
    %c0_2 = arith.constant 0 : index
    %1 = vector.load %arg2[%c0_1, %c0_2] : memref<2x128xf32, #tpu.memory_space<vmem>>, vector<2x128xf32>
    %c0_3 = arith.constant 0 : index
    %c0_4 = arith.constant 0 : index
    %2 = vector.load %arg3[%c0_3, %c0_4] : memref<1x128xf32, #tpu.memory_space<vmem>>, vector<1x128xf32>
    %3 = vector.extract_strided_slice %0 {offsets = [0, 0], sizes = [128, 1], strides = [1, 1]} : vector<128x2xf32> to vector<128x1xf32>
    %4 = vector.extract_strided_slice %1 {offsets = [0, 0], sizes = [1, 128], strides = [1, 1]} : vector<2x128xf32> to vector<1x128xf32>
    %5 = vector.broadcast %3 : vector<128x1xf32> to vector<128x128xf32>
    %6 = vector.broadcast %4 : vector<1x128xf32> to vector<128x128xf32>
    %7 = arith.mulf %5, %6 : vector<128x128xf32>
    %8 = vector.broadcast %2 : vector<1x128xf32> to vector<128x128xf32>
    %9 = arith.addf %8, %7 : vector<128x128xf32>
    %10 = vector.extract_strided_slice %0 {offsets = [0, 1], sizes = [128, 1], strides = [1, 1]} : vector<128x2xf32> to vector<128x1xf32>
    %11 = vector.extract_strided_slice %1 {offsets = [1, 0], sizes = [1, 128], strides = [1, 1]} : vector<2x128xf32> to vector<1x128xf32>
    %12 = vector.broadcast %10 : vector<128x1xf32> to vector<128x128xf32>
    %13 = vector.broadcast %11 : vector<1x128xf32> to vector<128x128xf32>
    %14 = arith.mulf %12, %13 : vector<128x128xf32>
    %15 = arith.addf %9, %14 : vector<128x128xf32>
    %cst = arith.constant 0.000000e+00 : f32
    %16 = vector.broadcast %cst : f32 to vector<128x128xf32>
    %17 = arith.maximumf %15, %16 : vector<128x128xf32>
    %18 = arith.truncf %17 : vector<128x128xf32> to vector<128x128xbf16>
    %c0_5 = arith.constant 0 : index
    %c0_6 = arith.constant 0 : index
    %19 = vector.load %arg4[%c0_5, %c0_6] : memref<128x128xbf16, #tpu.memory_space<vmem>>, vector<128x128xbf16>
    %cst_7 = arith.constant dense<0.000000e+00> : vector<128x128xf32>
    %20 = tpu.matmul %18, %19, %cst_7 {dimension_numbers = #tpu.dot_dimension_numbers<[1], [0], [0], [1], [0, 0, 1, 1], [], []>} : vector<128x128xbf16>, vector<128x128xbf16>, vector<128x128xf32> -> vector<128x128xf32>
    %21 = vector.shape_cast %20 : vector<128x128xf32> to vector<1x128x128xf32>
    %c0_8 = arith.constant 0 : index
    %c0_9 = arith.constant 0 : index
    %22 = vector.load %arg5[%c0_8, %c0_9] : memref<1x128xf32, #tpu.memory_space<vmem>>, vector<1x128xf32>
    %c0_10 = arith.constant 0 : index
    %c0_11 = arith.constant 0 : index
    %23 = vector.load %arg6[%c0_10, %c0_11] : memref<1x128xf32, #tpu.memory_space<vmem>>, vector<1x128xf32>
    %24 = vector.shape_cast %22 : vector<1x128xf32> to vector<1x1x128xf32>
    %25 = vector.broadcast %24 : vector<1x1x128xf32> to vector<1x128x128xf32>
    %26 = arith.addf %21, %25 : vector<1x128x128xf32>
    %cst_12 = arith.constant 0.000000e+00 : f32
    %27 = vector.broadcast %cst_12 : f32 to vector<1x128x128xf32>
    %28 = arith.maximumf %26, %27 : vector<1x128x128xf32>
    %29 = vector.shape_cast %23 : vector<1x128xf32> to vector<1x1x128xf32>
    %30 = vector.broadcast %29 : vector<1x1x128xf32> to vector<1x128x128xf32>
    %31 = arith.mulf %28, %30 : vector<1x128x128xf32>
    %cst_13 = arith.constant dense<0.000000e+00> : vector<1x128xf32>
    %32 = vector.multi_reduction <add>, %31, %cst_13 [2] : vector<1x128x128xf32> to vector<1x128xf32>
    %c0_14 = arith.constant 0 : index
    %c0_15 = arith.constant 0 : index
    %33 = vector.load %arg7[%c0_14, %c0_15] : memref<1x1xf32, #tpu.memory_space<vmem>>, vector<1x1xf32>
    %34 = vector.extract %33[0, 0] : f32 from vector<1x1xf32>
    %35 = vector.broadcast %34 : f32 to vector<1x128xf32>
    %36 = arith.addf %32, %35 : vector<1x128xf32>
    %37 = vector.shape_cast %36 : vector<1x128xf32> to vector<1x1x128xf32>
    %c0_16 = arith.constant 0 : index
    %c0_17 = arith.constant 0 : index
    %c0_18 = arith.constant 0 : index
    %38 = vector.load %arg8[%c0_16, %c0_17, %c0_18] : memref<1x1x128xf32, #tpu.memory_space<vmem>>, vector<1x1x128xf32>
    tpu.vector_store %arg8[%c0_16, %c0_17, %c0_18], %37 {strides = array<i32>} : memref<1x1x128xf32, #tpu.memory_space<vmem>>, vector<1x1x128xf32>,
    return
  }
  func.func @transform_0(%arg0: i32) -> (i32, i32) {
    %c0_i32 = arith.constant 0 : i32
    %c0_i32_0 = arith.constant 0 : i32
    return %arg0, %c0_i32 : i32, i32
  }
  func.func @transform_1(%arg0: i32) -> (i32, i32) {
    %c0_i32 = arith.constant 0 : i32
    %c0_i32_0 = arith.constant 0 : i32
    %c0_i32_1 = arith.constant 0 : i32
    return %c0_i32, %c0_i32_0 : i32, i32
  }
  func.func @transform_2(%arg0: i32) -> (i32, i32) {
    %c0_i32 = arith.constant 0 : i32
    %c0_i32_0 = arith.constant 0 : i32
    %c0_i32_1 = arith.constant 0 : i32
    return %c0_i32, %c0_i32_0 : i32, i32
  }
  func.func @transform_3(%arg0: i32) -> (i32, i32) {
    %c0_i32 = arith.constant 0 : i32
    %c0_i32_0 = arith.constant 0 : i32
    %c0_i32_1 = arith.constant 0 : i32
    return %c0_i32, %c0_i32_0 : i32, i32
  }
  func.func @transform_4(%arg0: i32) -> (i32, i32) {
    %c0_i32 = arith.constant 0 : i32
    %c0_i32_0 = arith.constant 0 : i32
    %c0_i32_1 = arith.constant 0 : i32
    return %c0_i32, %c0_i32_0 : i32, i32
  }
  func.func @transform_5(%arg0: i32) -> (i32, i32) {
    %c0_i32 = arith.constant 0 : i32
    %c0_i32_0 = arith.constant 0 : i32
    %c0_i32_1 = arith.constant 0 : i32
    return %c0_i32, %c0_i32_0 : i32, i32
  }
  func.func @transform_6(%arg0: i32) -> (i32, i32) {
    %c0_i32 = arith.constant 0 : i32
    %c0_i32_0 = arith.constant 0 : i32
    %c0_i32_1 = arith.constant 0 : i32
    return %c0_i32, %c0_i32_0 : i32, i32
  }
  func.func @transform_7(%arg0: i32) -> (i32, i32, i32) {
    %c0_i32 = arith.constant 0 : i32
    %c0_i32_0 = arith.constant 0 : i32
    %c0_i32_1 = arith.constant 0 : i32
    return %arg0, %c0_i32, %c0_i32_0 : i32, i32, i32
  }
}

</mosaic_0001>

<bundles_post_ra>
// kernel: tpu_custom_call.1
= control target key start
LH: loop header
LB: loop body
LE: loop exit
PB: predicated region body
PF: predicated region fallthrough
CT: control target
= control target key end

     0   :  { %s1154_s0 = inlined_call_operand.vmem [shape: f32[16,2], index: 0, kind: input, shape index: {}]   ;;  %s1155_s1 = inlined_call_operand.vmem [shape: f32[2,128], index: 1, kind: input, shape index: {}]   ;;  %s1156_s2 = inlined_call_operand.vmem [shape: f32[1,128], index: 2, kind: input, shape index: {}]   ;;  %s1157_s3 = inlined_call_operand.hbm [shape: bf16[128,128], index: 3, kind: input, shape index: {}]   ;;  %s1158_s4 = inlined_call_operand.vmem [shape: f32[1,128], index: 4, kind: input, shape index: {}]   ;;  %s1159_s5 = inlined_call_operand.vmem [shape: f32[1,128], index: 5, kind: input, shape index: {}]   ;;  %s1160_s6 = inlined_call_operand.<no memory space> [shape: f32[1,1], index: 6, kind: input, shape index: {}]   ;;  %s1161_s7 = inlined_call_operand.hbm [shape: f32[1,1,128], index: 7, kind: output, shape index: {}]  }
   0x1   :  { %v12_v0 = vstv %s1160_s6 }
   0x2   :  { %13 = vst [vmem:[#allocation2] sm:$0x1] %v12_v0 }
   0x3   :  { %14 = vsyncpa [#allocation4], 0 }
   0x4   :  { %15 = vsyncpa [#allocation5], 0  ;;  %s869_s26 = smov [#allocation3]  }
   0x5   :  { %s27_s27 = sshll.u32 %s869_s26, 4  ;;  %s28_s27 = int_to_ptr.vmem [resolvable:$true] %s27_s27 }
   0x6   :  { %s833_s28 = scalar_lea.vmem %s28_s27, 1024  ;;  %p838_p1 = scmp.lt.s32.totalorder %s28_s27, %s28_s27 }
   0x7   :  { %p834_p0 = scmp.ne.s32.totalorder %s28_s27, %s833_s28  ;;  %p839_p2 = scmp.lt.s32.totalorder %s833_s28, %s833_s28 }
   0x9   :  { %p840_p3 = por %p839_p2, %p838_p1 }
   0xb   :  { %p841_p4 = pnand %p840_p3, %p834_p0 }
   0xd   :  { %844 = shalt.err (!%p841_p4)
}
   0xe   :  { %s870_s29 = smov 64   ;;  %s871_s30 = smov 4  }
   0xf   :  { %33 = dma.hbm_to_vmem [thread:$0]  %s1157_s3, 1024, %s28_s27, [#allocation4], %s870_s29, %s870_s29, %s871_s30  }
  0x10   :  { %865 = dma.done.wait [#allocation4], 1024  }
  0x11   :  { %866 = vsyncadd [#allocation4], 4294966272  ;;  %v872_v1 = vmov 0   ;;  %v46_v2 = vld [vmem:[%s1154_s0 + $0x10] sm:$0xff]  ;;  %v44_v3 = vld [vmem:[%s1154_s0] sm:$0xff]  ;;  %v873_v10 = vmov 1   ;;  %v142_v29 = vlaneseq }
  0x12   :  { %810 = vset.pattern.permute.xlu1 %v872_v1  ;;  %809 = vset.pattern.permute.xlu0 %v872_v1  ;;  %v47_v4 = vld [vmem:[%s1154_s0 + $0x18] sm:$0xff]  ;;  %v45_v5 = vld [vmem:[%s1154_s0 + $0x8] sm:$0xff]  ;;  %v943_v9 = vld [vmem:[%s1154_s0 + $0x30] sm:$0xff]  ;;  %vm609_vm0 = vcmask 130112   ;;  %vm616_vm1 = vcmask 195712   ;;  %vm623_vm2 = vcmask 261312  }
  0x13   :  { %74 = vperm.xlu1 %810, %v46_v2   ;;  %64 = vperm.xlu0 %809, %v44_v3   ;;  %v938_v6 = vld [vmem:[%s1154_s0 + $0x28] sm:$0xff]  ;;  %v817_v7 = vld [vmem:[#allocation3 + $0x38] sm:$0xff]   ;;  %v818_v8 = vld [vmem:[#allocation3 + $0x30] sm:$0xff]   ;;  %v986_v32 = vshrl.u32 %v142_v29, 7  ;;  %vm630_vm3 = vcmask 326912   ;;  %vm637_vm4 = vcmask 392512  }
  0x14   :  { %753 = vmatprep.subr.bf16.mxu0 %v817_v7  ;;  %785 = vmatprep.subr.bf16.mxu1 %v817_v7  ;;  %v819_v11 = vld [vmem:[#allocation3 + $0x28] sm:$0xff]   ;;  %v820_v13 = vld [vmem:[#allocation3 + $0x20] sm:$0xff]   ;;  %v821_v16 = vld [vmem:[#allocation3 + $0x18] sm:$0xff]   ;;  %vm644_vm5 = vcmask 458112   ;;  %vm651_vm6 = vcmask 523712   ;;  %vm658_vm7 = vcmask 589312  }
  0x15   :  { %754 = vmatpush3.bf16.msra.mxu0 %v817_v7  ;;  %793 = vmatpush3.bf16.msra.mxu1 %v817_v7  ;;  %v54_v12 = vld [vmem:[%s1154_s0 + $0x50] sm:$0xff]  ;;  %v48_v14 = vld [vmem:[%s1154_s0 + $0x20] sm:$0xff]  ;;  %v57_v15 = vld [vmem:[%s1154_s0 + $0x68] sm:$0xff]  ;;  %v144_v35 = vsub.s32 0, %v986_v32  ;;  %v250_v39 = vsub.s32 1, %v986_v32  ;;  %vm665_vm8 = vcmask 654912  }
  0x16   :  { %755 = vmatprep.subr.bf16.mxu0 %v818_v8  ;;  %786 = vmatprep.subr.bf16.mxu1 %v818_v8  ;;  %v52_v17 = vld [vmem:[%s1154_s0 + $0x40] sm:$0xff]  ;;  %v822_v18 = vld [vmem:[#allocation3 + $0x10] sm:$0xff]   ;;  %v53_v19 = vld [vmem:[%s1154_s0 + $0x48] sm:$0xff]  ;;  %vm672_vm9 = vcmask 720512   ;;  %vm679_vm10 = vcmask 786112   ;;  %vm686_vm11 = vcmask 851712  }
  0x17   :  { %79 = vperm.xlu1 %810, %v47_v4   ;;  %69 = vperm.xlu0 %809, %v45_v5   ;;  %v823_v20 = vld [vmem:[#allocation3 + $0x8] sm:$0xff]   ;;  %v51_v21 = vld [vmem:[%s1154_s0 + $0x38] sm:$0xff]  ;;  %v824_v22 = vld [vmem:[#allocation3] sm:$0xff]   ;;  %vm693_vm12 = vcmask 917312   ;;  %vm700_vm13 = vcmask 982912   ;;  %vm707_vm14 = vcmask 1048512  }
  0x18   :  { %v55_v23 = vld [vmem:[%s1154_s0 + $0x58] sm:$0xff]  ;;  %v56_v24 = vld [vmem:[%s1154_s0 + $0x60] sm:$0xff]  ;;  %v58_v26 = vld [vmem:[%s1154_s0 + $0x70] sm:$0xff] }
  0x19   :  { %756 = vmatpush3.bf16.msra.mxu0 %v818_v8  ;;  %794 = vmatpush3.bf16.msra.mxu1 %v818_v8  ;;  %v59_v25 = vld [vmem:[%s1154_s0 + $0x78] sm:$0xff]  ;;  %v60_v37 = vld [vmem:[%s1155_s1] sm:$0x3] }
  0x1a   :  { %757 = vmatprep.subr.bf16.mxu0 %v819_v11  ;;  %787 = vmatprep.subr.bf16.mxu1 %v819_v11  ;;  %v993_v40 = vrot.slane %v60_v37, %v144_v35  ;;  %v998_v43 = vrot.slane %v60_v37, %v250_v39  ;;  %v1005_v46 = vld [vmem:[%s1156_s2] ss:$0 sm:$0xff] }
  0x1b   :  { %811 = vset.pattern.permute.xlu1 %v873_v10  ;;  %89 = vperm.xlu0 %809, %v938_v6  }
  0x1c   :  { %189 = vperm.xlu1 %811, %v45_v5  }
  0x1d   :  { %758 = vmatpush3.bf16.msra.mxu0 %v819_v11  ;;  %795 = vmatpush3.bf16.msra.mxu1 %v819_v11 }
  0x1e   :  { %759 = vmatprep.subr.bf16.mxu0 %v820_v13  ;;  %788 = vmatprep.subr.bf16.mxu1 %v820_v13 }
  0x1f   :  { %94 = vperm.xlu0 %809, %v943_v9  }
  0x20   :  { %193 = vperm.xlu1 %811, %v46_v2  }
  0x21   :  { %760 = vmatpush3.bf16.msra.mxu0 %v820_v13  ;;  %796 = vmatpush3.bf16.msra.mxu1 %v820_v13 }
  0x22   :  { %761 = vmatprep.subr.bf16.mxu0 %v821_v16  ;;  %789 = vmatprep.subr.bf16.mxu1 %v821_v16 }
  0x23   :  { %114 = vperm.xlu0 %809, %v54_v12  }
  0x24   :  { %812 = vset.pattern.permute.xlu1 %v872_v1 }
  0x25   :  { %84 = vperm.xlu1 %812, %v48_v14   ;;  %762 = vmatpush3.bf16.msra.mxu0 %v821_v16 }
  0x26   :  { %763 = vmatprep.subr.bf16.mxu0 %v822_v18  ;;  %797 = vmatpush3.bf16.msra.mxu1 %v821_v16 }
  0x27   :  { %129 = vperm.xlu0 %809, %v57_v15   ;;  %790 = vmatprep.subr.bf16.mxu1 %v822_v18 }
  0x29   :  { %104 = vperm.xlu1 %812, %v52_v17   ;;  %764 = vmatpush3.bf16.msra.mxu0 %v822_v18 }
  0x2a   :  { %765 = vmatprep.subr.bf16.mxu0 %v823_v20  ;;  %798 = vmatpush3.bf16.msra.mxu1 %v822_v18 }
  0x2b   :  { %815 = vset.pattern.permute.xlu0 %v873_v10  ;;  %791 = vmatprep.subr.bf16.mxu1 %v823_v20 }
  0x2c   :  { %185 = vperm.xlu0 %815, %v44_v3  }
  0x2d   :  { %109 = vperm.xlu1 %812, %v53_v19   ;;  %766 = vmatpush3.bf16.msra.mxu0 %v823_v20 }
  0x2e   :  { %767 = vmatprep.subr.bf16.mxu0 %v824_v22  ;;  %799 = vmatpush3.bf16.msra.mxu1 %v823_v20 }
  0x2f   :  { %792 = vmatprep.subr.bf16.mxu1 %v824_v22 }
  0x30   :  { %197 = vperm.xlu0 %815, %v47_v4  }
  0x31   :  { %99 = vperm.xlu1 %812, %v51_v21   ;;  %768 = vmatpush3.bf16.msra.mxu0 %v824_v22 }
  0x32   :  { %800 = vmatpush3.bf16.msra.mxu1 %v824_v22 }
  0x34   :  { %201 = vperm.xlu0 %815, %v48_v14  }
  0x35   :  { %119 = vperm.xlu1 %812, %v55_v23  }
  0x38   :  { %221 = vperm.xlu0 %815, %v53_v19  }
  0x39   :  { %813 = vset.pattern.permute.xlu1 %v873_v10 }
  0x3a   :  { %205 = vperm.xlu1 %813, %v938_v6  }
  0x3c   :  { %213 = vperm.xlu0 %815, %v51_v21  }
  0x3e   :  { %217 = vperm.xlu1 %813, %v52_v17  }
  0x40   :  { %229 = vperm.xlu0 %815, %v55_v23  }
  0x42   :  { %209 = vperm.xlu1 %813, %v943_v9  }
  0x44   :  { %233 = vperm.xlu0 %815, %v56_v24  }
  0x46   :  { %225 = vperm.xlu1 %813, %v54_v12  }
  0x48   :  { %245 = vperm.xlu0 %815, %v59_v25  }
  0x4a   :  { %814 = vset.pattern.permute.xlu1 %v872_v1 }
  0x4b   :  { %124 = vperm.xlu1 %814, %v56_v24  }
  0x4f   :  { %134 = vperm.xlu1 %814, %v58_v26  }
  0x53   :  { %139 = vperm.xlu1 %814, %v59_v25  }
  0x57   :  { %816 = vset.pattern.permute.xlu1 %v873_v10 }
  0x58   :  { %237 = vperm.xlu1 %816, %v57_v15  }
  0x5c   :  { %241 = vperm.xlu1 %816, %v58_v26  }
  0x8e   :  { %v75_v27 = vpop.permute.xlu1 %74  ;;  %v65_v28 = vpop.permute.xlu0 %64 }
  0x8f   :  { %v146_v47 = vmul.f32 %v993_v40, %v65_v28  ;;  %v148_v51 = vmul.f32 %v993_v40, %v75_v27 }
  0x91   :  { %v168_v54 = vadd.f32 %v1005_v46, %v146_v47  ;;  %v170_v59 = vadd.f32 %v1005_v46, %v148_v51 }
  0x92   :  { %v80_v30 = vpop.permute.xlu1 %79  ;;  %v70_v31 = vpop.permute.xlu0 %69 }
  0x93   :  { %v147_v42 = vmul.f32 %v993_v40, %v70_v31  ;;  %v149_v52 = vmul.f32 %v993_v40, %v80_v30 }
  0x95   :  { %v169_v48 = vadd.f32 %v1005_v46, %v147_v42  ;;  %v171_v61 = vadd.f32 %v1005_v46, %v149_v52 }
  0x96   :  { %v90_v33 = vpop.permute.xlu0 %89 }
  0x97   :  { %v190_v34 = vpop.permute.xlu1 %189  ;;  %v151_v11 = vmul.f32 %v993_v40, %v90_v33 }
  0x98   :  { %v253_v49 = vmul.f32 %v998_v43, %v190_v34 }
  0x99   :  { %v173_v20 = vadd.f32 %v1005_v46, %v151_v11 }
  0x9a   :  { %v95_v36 = vpop.permute.xlu0 %94  ;;  %v269_v58 = vadd.f32 %v253_v49, %v169_v48 }
  0x9b   :  { %v194_v38 = vpop.permute.xlu1 %193  ;;  %v152_v27 = vmul.f32 %v993_v40, %v95_v36 }
  0x9c   :  { %v254_v55 = vmul.f32 %v998_v43, %v194_v38  ;;  %v285_v3 = vmax.f32 %v269_v58, 0.0 }
  0x9d   :  { %v174_v48 = vadd.f32 %v1005_v46, %v152_v27 }
  0x9e   :  { %v995_v41 = vpop.permute.xlu0 %114  ;;  %v270_v63 = vadd.f32 %v254_v55, %v170_v59 }
  0x9f   :  { %v156_v36 = vmul.f32 %v993_v40, %v995_v41 }
  0xa0   :  { %v85_v44 = vpop.permute.xlu1 %84  ;;  %v286_v7 = vmax.f32 %v270_v63, 0.0 }
  0xa1   :  { %v150_v8 = vmul.f32 %v993_v40, %v85_v44  ;;  %v178_v58 = vadd.f32 %v1005_v46, %v156_v36 }
  0xa2   :  { %v1000_v45 = vpop.permute.xlu0 %129 }
  0xa3   :  { %v172_v16 = vadd.f32 %v1005_v46, %v150_v8 }
  0xa4   :  { %v105_v50 = vpop.permute.xlu1 %104 }
  0xa5   :  { %v154_v17 = vmul.f32 %v993_v40, %v105_v50 }
  0xa7   :  { %v186_v53 = vpop.permute.xlu0 %185  ;;  %v176_v28 = vadd.f32 %v1005_v46, %v154_v17 }
  0xa8   :  { %v252_v56 = vmul.f32 %v998_v43, %v186_v53  ;;  %v110_v57 = vpop.permute.xlu1 %109 }
  0xa9   :  { %v155_v14 = vmul.f32 %v993_v40, %v110_v57 }
  0xaa   :  { %v268_v60 = vadd.f32 %v252_v56, %v168_v54 }
  0xab   :  { %v198_v62 = vpop.permute.xlu0 %197  ;;  %v177_v23 = vadd.f32 %v1005_v46, %v155_v14 }
  0xac   :  { %v255_v0 = vmul.f32 %v998_v43, %v198_v62  ;;  %v100_v1 = vpop.permute.xlu1 %99  ;;  %v284_v2 = vmax.f32 %v268_v60, 0.0 }
  0xad   :  { %v153_v25 = vmul.f32 %v993_v40, %v100_v1 }
  0xae   :  { %v271_v4 = vadd.f32 %v255_v0, %v171_v61  ;;  %v300_v5 = vpack.c.bf16 %v285_v3, %v284_v2 }
  0xaf   :  { %v202_v6 = vpop.permute.xlu0 %201  ;;  %v175_v39 = vadd.f32 %v1005_v46, %v153_v25 }
  0xb0   :  { %v287_v9 = vmax.f32 %v271_v4, 0.0  ;;  %v120_v10 = vpop.permute.xlu1 %119  ;;  %769 = vmatprep.mubr.bf16.mxu0 %v300_v5  ;;  %v256_v12 = vmul.f32 %v998_v43, %v202_v6 }
  0xb1   :  { %v157_v42 = vmul.f32 %v993_v40, %v120_v10  ;;  %v159_v10 = vmul.f32 %v993_v40, %v1000_v45 }
  0xb2   :  { %v301_v13 = vpack.c.bf16 %v287_v9, %v286_v7  ;;  %v272_v21 = vadd.f32 %v256_v12, %v172_v16 }
  0xb3   :  { %v222_v15 = vpop.permute.xlu0 %221  ;;  %v179_v55 = vadd.f32 %v1005_v46, %v157_v42  ;;  %v181_v16 = vadd.f32 %v1005_v46, %v159_v10 }
  0xb4   :  { %770 = vmatmul.mubr.bf16.vlgmr.msra.gmra.mxu0 %v301_v13  ;;  %v261_v18 = vmul.f32 %v998_v43, %v222_v15  ;;  %v288_v33 = vmax.f32 %v272_v21, 0.0 }
  0xb5   :  { %v206_v19 = vpop.permute.xlu1 %205 }
  0xb6   :  { %v257_v22 = vmul.f32 %v998_v43, %v206_v19  ;;  %v277_v31 = vadd.f32 %v261_v18, %v177_v23 }
  0xb7   :  { %v214_v24 = vpop.permute.xlu0 %213 }
  0xb8   :  { %v273_v26 = vadd.f32 %v257_v22, %v173_v20  ;;  %v259_v35 = vmul.f32 %v998_v43, %v214_v24  ;;  %v293_v50 = vmax.f32 %v277_v31, 0.0 }
  0xb9   :  { %v218_v30 = vpop.permute.xlu1 %217 }
  0xba   :  { %v289_v34 = vmax.f32 %v273_v26, 0.0  ;;  %v260_v37 = vmul.f32 %v998_v43, %v218_v30  ;;  %v275_v51 = vadd.f32 %v259_v35, %v175_v39 }
  0xbb   :  { %v230_v38 = vpop.permute.xlu0 %229 }
  0xbc   :  { %v302_v44 = vpack.c.bf16 %v289_v34, %v288_v33  ;;  %v276_v47 = vadd.f32 %v260_v37, %v176_v28  ;;  %v263_v52 = vmul.f32 %v998_v43, %v230_v38  ;;  %v291_v60 = vmax.f32 %v275_v51, 0.0  ;;  %v563_v33 = vld [vmem:[#allocation2] sm:$0x1] }
  0xbd   :  { %v210_v49 = vpop.permute.xlu1 %209  ;;  %801 = vpush %v563_v33  ;;  %v1059_v34 = vld [vmem:[%s1158_s4] ss:$0 sm:$0xff] }
  0xbe   :  { %v258_v53 = vmul.f32 %v998_v43, %v210_v49  ;;  %773 = vmatprep.mubr.bf16.mxu0 %v302_v44  ;;  %v292_v54 = vmax.f32 %v276_v47, 0.0  ;;  %v279_v61 = vadd.f32 %v263_v52, %v179_v55 }
  0xbf   :  { %v234_v7 = vpop.permute.xlu0 %233 }
  0xc0   :  { %v274_v56 = vadd.f32 %v258_v53, %v174_v48  ;;  %v304_v57 = vpack.c.bf16 %v293_v50, %v292_v54  ;;  %v295_v1 = vmax.f32 %v279_v61, 0.0  ;;  %v264_v12 = vmul.f32 %v998_v43, %v234_v7 }
  0xc1   :  { %v226_v59 = vpop.permute.xlu1 %225 }
  0xc2   :  { %v290_v62 = vmax.f32 %v274_v56, 0.0  ;;  %v262_v41 = vmul.f32 %v998_v43, %v226_v59  ;;  %777 = vmatprep.mubr.bf16.mxu1 %v304_v57 }
  0xc3   :  { %v246_v13 = vpop.permute.xlu0 %245 }
  0xc4   :  { %v278_v63 = vadd.f32 %v262_v41, %v178_v58  ;;  %v303_v0 = vpack.c.bf16 %v291_v60, %v290_v62  ;;  %v267_v20 = vmul.f32 %v998_v43, %v246_v13 }
  0xc6   :  { %v294_v2 = vmax.f32 %v278_v63, 0.0  ;;  %v125_v3 = vpop.permute.xlu1 %124  ;;  %774 = vmatmul.mubr.bf16.gmra.mxu0 %v303_v0 }
  0xc7   :  { %v158_v6 = vmul.f32 %v993_v40, %v125_v3 }
  0xc8   :  { %v305_v4 = vpack.c.bf16 %v295_v1, %v294_v2 }
  0xc9   :  { %v180_v9 = vadd.f32 %v1005_v46, %v158_v6 }
  0xca   :  { %v135_v5 = vpop.permute.xlu1 %134  ;;  %778 = vmatmul.mubr.bf16.vlgmr.msra.gmra.mxu1 %v305_v4 }
  0xcb   :  { %v280_v14 = vadd.f32 %v264_v12, %v180_v9  ;;  %v160_v17 = vmul.f32 %v993_v40, %v135_v5 }
  0xcd   :  { %v296_v22 = vmax.f32 %v280_v14, 0.0  ;;  %v182_v23 = vadd.f32 %v1005_v46, %v160_v17 }
  0xce   :  { %v140_v8 = vpop.permute.xlu1 %139 }
  0xcf   :  { %v161_v11 = vmul.f32 %v993_v40, %v140_v8 }
  0xd1   :  { %v183_v18 = vadd.f32 %v1005_v46, %v161_v11 }
  0xd3   :  { %v238_v15 = vpop.permute.xlu1 %237  ;;  %v283_v24 = vadd.f32 %v267_v20, %v183_v18 }
  0xd4   :  { %v265_v19 = vmul.f32 %v998_v43, %v238_v15 }
  0xd5   :  { %v299_v30 = vmax.f32 %v283_v24, 0.0 }
  0xd6   :  { %v281_v21 = vadd.f32 %v265_v19, %v181_v16 }
  0xd7   :  { %v242_v45 = vpop.permute.xlu1 %241 }
  0xd8   :  { %v297_v25 = vmax.f32 %v281_v21, 0.0  ;;  %v266_v26 = vmul.f32 %v998_v43, %v242_v45  ;;  %v1065_v43 = vld [vmem:[%s1159_s5] ss:$0 sm:$0xff]  ;;  %s874_s5 = smov [#allocation6]  }
  0xd9   :  { %s717_s20 = sshll.u32 %s874_s5, 4  ;;  %s718_s20 = int_to_ptr.vmem [resolvable:$true] %s717_s20 }
  0xda   :  { %v282_v27 = vadd.f32 %v266_v26, %v182_v23  ;;  %v306_v28 = vpack.c.bf16 %v297_v25, %v296_v22  ;;  %s845_s21 = scalar_lea.vmem %s718_s20, 16  ;;  %s849_s22 = scalar_lea.vmem %s718_s20, 32 }
  0xdb   :  { %p846_p5 = scmp.ne.s32.totalorder %s718_s20, %s845_s21  ;;  %p850_p6 = scmp.lt.s32.totalorder %s718_s20, %s718_s20 }
  0xdc   :  { %v298_v31 = vmax.f32 %v282_v27, 0.0  ;;  %781 = vmatprep.mubr.bf16.mxu1 %v306_v28  ;;  %p851_p7 = scmp.lt.s32.totalorder %s849_s22, %s845_s21 }
  0xde   :  { %v307_v40 = vpack.c.bf16 %v299_v30, %v298_v31  ;;  %p852_p8 = por %p851_p7, %p850_p6 }
  0xe0   :  { %782 = vmatmul.mubr.bf16.gmra.mxu1 %v307_v40  ;;  %p853_p9 = pnand %p852_p8, %p846_p5 }
  0xee   :  { %s802_s4 = spop %801 }
 0x174   :  { %v771_v35 = vpop.f32.mrf.mxu0 }
 0x175   :  { %v479_v46 = vadd.f32 %v771_v35, %v1059_v34 }
 0x176   :  { %v406_v37 = vpop.f32.mrf.mxu0 }
 0x177   :  { %v495_v38 = vmax.f32 %v479_v46, 0.0  ;;  %v477_v39 = vadd.f32 %v1059_v34, %v406_v37 }
 0x178   :  { %v772_v42 = vpop.f32.mrf.mxu0 }
 0x179   :  { %v493_v44 = vmax.f32 %v477_v39, 0.0  ;;  %v480_v47 = vadd.f32 %v772_v42, %v1059_v34  ;;  %v517_v48 = vmul.f32 %v1065_v43, %v495_v38 }
 0x17a   :  { %v409_v51 = vpop.f32.mrf.mxu0 }
 0x17b   :  { %v496_v36 = vmax.f32 %v480_v47, 0.0  ;;  %535 = vadd.xlane.f32.xlu0 %v517_v48  ;;  %v515_v49 = vmul.f32 %v1065_v43, %v493_v44  ;;  %v478_v55 = vadd.f32 %v1059_v34, %v409_v51  ;;  %v1099_v44 = vand.u32 127, %v142_v29 }
 0x17d   :  { %531 = vadd.xlane.f32.xlu1 %v515_v49  ;;  %v518_v50 = vmul.f32 %v1065_v43, %v496_v36  ;;  %v494_v61 = vmax.f32 %v478_v55, 0.0  ;;  %v611_v36 = vadd.s32 4294967280, %v1099_v44  ;;  %v1103_v49 = vstv %s802_s4 }
 0x17e   :  { %v618_v29 = vadd.s32 4294967272, %v1099_v44 }
 0x17f   :  { %v516_v5 = vmul.f32 %v1065_v43, %v494_v61  ;;  %v614_v55 = vsub.s32 %v611_v36, %v986_v32  ;;  %v653_v61 = vadd.s32 4294967232, %v1099_v44 }
 0x181   :  { %537 = vadd.xlane.f32.xlu1 %v518_v50 }
 0x186   :  { %v775_v52 = vpop.f32.mrf.mxu0 }
 0x187   :  { %v483_v41 = vadd.f32 %v775_v52, %v1059_v34 }
 0x188   :  { %v422_v53 = vpop.f32.mrf.mxu0 }
 0x189   :  { %v481_v4 = vadd.f32 %v1059_v34, %v422_v53  ;;  %v499_v6 = vmax.f32 %v483_v41, 0.0 }
 0x18a   :  { %v779_v54 = vpop.f32.mrf.mxu1  ;;  %v776_v58 = vpop.f32.mrf.mxu0 }
 0x18b   :  { %v484_v63 = vadd.f32 %v776_v58, %v1059_v34  ;;  %v497_v10 = vmax.f32 %v481_v4, 0.0  ;;  %v487_v11 = vadd.f32 %v779_v54, %v1059_v34  ;;  %v521_v14 = vmul.f32 %v1065_v43, %v499_v6 }
 0x18c   :  { %v438_v56 = vpop.f32.mrf.mxu1  ;;  %v425_v2 = vpop.f32.mrf.mxu0  ;;  %v632_v58 = vadd.s32 4294967256, %v1099_v44  ;;  %v646_v4 = vadd.s32 4294967240, %v1099_v44 }
 0x18d   :  { %v485_v57 = vadd.f32 %v1059_v34, %v438_v56  ;;  %v500_v7 = vmax.f32 %v484_v63, 0.0  ;;  %v482_v8 = vadd.f32 %v1059_v34, %v425_v2  ;;  %v503_v16 = vmax.f32 %v487_v11, 0.0 }
 0x18e   :  { %v780_v59 = vpop.f32.mrf.mxu1  ;;  %v519_v18 = vmul.f32 %v1065_v43, %v497_v10  ;;  %v639_v63 = vadd.s32 4294967248, %v1099_v44  ;;  %v635_v6 = vsub.s32 %v632_v58, %v986_v32 }
 0x18f   :  { %v501_v60 = vmax.f32 %v485_v57, 0.0  ;;  %v498_v12 = vmax.f32 %v482_v8, 0.0  ;;  %v488_v13 = vadd.f32 %v780_v59, %v1059_v34  ;;  %v522_v15 = vmul.f32 %v1065_v43, %v500_v7 }
 0x190   :  { %v441_v62 = vpop.f32.mrf.mxu1  ;;  %v525_v21 = vmul.f32 %v1065_v43, %v503_v16  ;;  %v625_v59 = vadd.s32 4294967264, %v1099_v44  ;;  %v656_v8 = vsub.s32 %v653_v61, %v986_v32  ;;  %v642_v10 = vsub.s32 %v639_v63, %v986_v32 }
 0x191   :  { %v486_v0 = vadd.f32 %v1059_v34, %v441_v62  ;;  %v523_v1 = vmul.f32 %v1065_v43, %v501_v60  ;;  %v504_v17 = vmax.f32 %v488_v13, 0.0  ;;  %v520_v19 = vmul.f32 %v1065_v43, %v498_v12 }
 0x192   :  { %v660_v62 = vadd.s32 4294967224, %v1099_v44  ;;  %v628_v7 = vsub.s32 %v625_v59, %v986_v32 }
 0x193   :  { %v502_v3 = vmax.f32 %v486_v0, 0.0  ;;  %547 = vadd.xlane.f32.xlu0 %v523_v1  ;;  %v526_v22 = vmul.f32 %v1065_v43, %v504_v17  ;;  %v621_v1 = vsub.s32 %v618_v29, %v986_v32 }
 0x195   :  { %v524_v9 = vmul.f32 %v1065_v43, %v502_v3 }
 0x197   :  { %533 = vadd.xlane.f32.xlu0 %v516_v5  ;;  %549 = vadd.xlane.f32.xlu1 %v524_v9  ;;  %v663_v9 = vsub.s32 %v660_v62, %v986_v32 }
 0x19b   :  { %543 = vadd.xlane.f32.xlu0 %v521_v14  ;;  %545 = vadd.xlane.f32.xlu1 %v522_v15 }
 0x19f   :  { %539 = vadd.xlane.f32.xlu0 %v519_v18  ;;  %541 = vadd.xlane.f32.xlu1 %v520_v19  ;;  %v649_v18 = vsub.s32 %v646_v4, %v986_v32 }
 0x1a0   :  { %v783_v20 = vpop.f32.mrf.mxu1 }
 0x1a1   :  { %v491_v23 = vadd.f32 %v783_v20, %v1059_v34 }
 0x1a2   :  { %v454_v45 = vpop.f32.mrf.mxu1 }
 0x1a3   :  { %v489_v24 = vadd.f32 %v1059_v34, %v454_v45  ;;  %551 = vadd.xlane.f32.xlu0 %v525_v21  ;;  %553 = vadd.xlane.f32.xlu1 %v526_v22  ;;  %v507_v28 = vmax.f32 %v491_v23, 0.0  ;;  %v674_v23 = vadd.s32 4294967208, %v1099_v44 }
 0x1a4   :  { %v784_v25 = vpop.f32.mrf.mxu1 }
 0x1a5   :  { %v505_v26 = vmax.f32 %v489_v24, 0.0  ;;  %v492_v30 = vadd.f32 %v784_v25, %v1059_v34  ;;  %v529_v46 = vmul.f32 %v1065_v43, %v507_v28  ;;  %v667_v24 = vadd.s32 4294967216, %v1099_v44 }
 0x1a6   :  { %v457_v27 = vpop.f32.mrf.mxu1 }
 0x1a7   :  { %v490_v31 = vadd.f32 %v1059_v34, %v457_v27  ;;  %v527_v40 = vmul.f32 %v1065_v43, %v505_v26  ;;  %v508_v35 = vmax.f32 %v492_v30, 0.0  ;;  %v604_v34 = vadd.s32 4294967288, %v1099_v44 }
 0x1a9   :  { %v506_v33 = vmax.f32 %v490_v31, 0.0  ;;  %555 = vadd.xlane.f32.xlu0 %v527_v40  ;;  %v530_v38 = vmul.f32 %v1065_v43, %v508_v35  ;;  %v607_v50 = vsub.s32 %v604_v34, %v986_v32  ;;  %v681_v40 = vadd.s32 4294967200, %v1099_v44 }
 0x1ab   :  { %v528_v37 = vmul.f32 %v1065_v43, %v506_v33  ;;  %v602_v43 = vsub.s32 %v1099_v44, %v986_v32  ;;  %v684_v36 = vsub.s32 %v681_v40, %v986_v32 }
 0x1ad   :  { %559 = vadd.xlane.f32.xlu0 %v529_v46  ;;  %557 = vadd.xlane.f32.xlu1 %v528_v37 }
 0x1b1   :  { %561 = vadd.xlane.f32.xlu1 %v530_v38  ;;  %v670_v38 = vsub.s32 %v667_v24, %v986_v32 }
 0x204   :  { %v536_v42 = vpop.xlane.xlu0 %535 }
 0x205   :  { %v568_v56 = vadd.f32 %v1103_v49, %v536_v42 }
 0x206   :  { %v532_v39 = vpop.xlane.xlu1 %531 }
 0x207   :  { %v566_v51 = vadd.f32 %v1103_v49, %v532_v39  ;;  %v615_v5 = vrot.slane %v568_v56, %v614_v55  ;;  %v702_v55 = vadd.s32 4294967176, %v1099_v44 }
 0x209   :  { %v603_v60 = vrot.slane %v566_v51, %v602_v43  ;;  %v695_v43 = vadd.s32 4294967184, %v1099_v44 }
 0x20a   :  { %v538_v47 = vpop.xlane.xlu1 %537 }
 0x20b   :  { %v569_v2 = vadd.f32 %v1103_v49, %v538_v47  ;;  %v688_v47 = vadd.s32 4294967192, %v1099_v44  ;;  %v698_v59 = vsub.s32 %v695_v43, %v986_v32 }
 0x20d   :  { %v622_v17 = vrot.slane %v569_v2, %v621_v1  ;;  %v705_v1 = vsub.s32 %v702_v55, %v986_v32 }
 0x21c   :  { %v548_v48 = vpop.xlane.xlu0 %547 }
 0x21d   :  { %v574_v20 = vadd.f32 %v1103_v49, %v548_v48  ;;  %v677_v48 = vsub.s32 %v674_v23, %v986_v32 }
 0x21f   :  { %v657_v33 = vrot.slane %v574_v20, %v656_v8 }
 0x220   :  { %v550_v52 = vpop.xlane.xlu1 %549  ;;  %v534_v53 = vpop.xlane.xlu0 %533 }
 0x221   :  { %v567_v54 = vadd.f32 %v1103_v49, %v534_v53  ;;  %v575_v25 = vadd.f32 %v1103_v49, %v550_v52 }
 0x223   :  { %v608_v57 = vrot.slane %v567_v54, %v607_v50  ;;  %v664_v42 = vrot.slane %v575_v25, %v663_v9  ;;  %v691_v54 = vsub.s32 %v688_v47, %v986_v32 }
 0x224   :  { %v546_v41 = vpop.xlane.xlu1 %545  ;;  %v544_v0 = vpop.xlane.xlu0 %543 }
 0x225   :  { %v610_v3 = vsel %vm609_vm0, %v608_v57, %v603_v60  ;;  %v572_v14 = vadd.f32 %v1103_v49, %v544_v0  ;;  %v573_v19 = vadd.f32 %v1103_v49, %v546_v41 }
 0x226   :  { %v617_v13 = vsel %vm616_vm1, %v615_v5, %v610_v3 }
 0x227   :  { %v624_v45 = vsel %vm623_vm2, %v622_v17, %v617_v13  ;;  %v643_v26 = vrot.slane %v572_v14, %v642_v10  ;;  %v650_v30 = vrot.slane %v573_v19, %v649_v18 }
 0x228   :  { %v542_v11 = vpop.xlane.xlu1 %541  ;;  %v540_v12 = vpop.xlane.xlu0 %539 }
 0x229   :  { %v571_v15 = vadd.f32 %v1103_v49, %v542_v11  ;;  %v570_v16 = vadd.f32 %v1103_v49, %v540_v12 }
 0x22b   :  { %v636_v21 = vrot.slane %v571_v15, %v635_v6  ;;  %v629_v22 = vrot.slane %v570_v16, %v628_v7 }
 0x22c   :  { %v552_v28 = vpop.xlane.xlu0 %551  ;;  %v554_v46 = vpop.xlane.xlu1 %553 }
 0x22d   :  { %v631_v27 = vsel %vm630_vm3, %v629_v22, %v624_v45  ;;  %v576_v39 = vadd.f32 %v1103_v49, %v552_v28  ;;  %v577_v51 = vadd.f32 %v1103_v49, %v554_v46 }
 0x22e   :  { %v638_v31 = vsel %vm637_vm4, %v636_v21, %v631_v27 }
 0x22f   :  { %v645_v35 = vsel %vm644_vm5, %v643_v26, %v638_v31  ;;  %v671_v29 = vrot.slane %v576_v39, %v670_v38  ;;  %v678_v61 = vrot.slane %v577_v51, %v677_v48 }
 0x230   :  { %v652_v37 = vsel %vm651_vm6, %v650_v30, %v645_v35 }
 0x231   :  { %v659_v34 = vsel %vm658_vm7, %v657_v33, %v652_v37 }
 0x232   :  { %v556_v50 = vpop.xlane.xlu0 %555  ;;  %v666_v52 = vsel %vm665_vm8, %v664_v42, %v659_v34 }
 0x233   :  { %v578_v53 = vadd.f32 %v1103_v49, %v556_v50  ;;  %v673_v56 = vsel %vm672_vm9, %v671_v29, %v666_v52 }
 0x234   :  { %v680_v63 = vsel %vm679_vm10, %v678_v61, %v673_v56 }
 0x235   :  { %v685_v57 = vrot.slane %v578_v53, %v684_v36 }
 0x236   :  { %v558_v58 = vpop.xlane.xlu1 %557  ;;  %v560_v60 = vpop.xlane.xlu0 %559 }
 0x237   :  { %v579_v62 = vadd.f32 %v1103_v49, %v558_v58  ;;  %v580_v41 = vadd.f32 %v1103_v49, %v560_v60  ;;  %v687_v2 = vsel %vm686_vm11, %v685_v57, %v680_v63 }
 0x239   :  { %v692_v0 = vrot.slane %v579_v62, %v691_v54  ;;  %v699_v44 = vrot.slane %v580_v41, %v698_v59 }
 0x23a   :  { %v562_v3 = vpop.xlane.xlu1 %561 }
 0x23b   :  { %v694_v4 = vsel %vm693_vm12, %v692_v0, %v687_v2  ;;  %v581_v5 = vadd.f32 %v1103_v49, %v562_v3 }
 0x23c   :  { %v701_v7 = vsel %vm700_vm13, %v699_v44, %v694_v4 }
 0x23d   :  { %v706_v6 = vrot.slane %v581_v5, %v705_v1 }
 0x23f   :  { %v708_v8 = vsel %vm707_vm14, %v706_v6, %v701_v7 }
 0x240   :  { %710 = vst [vmem:[#allocation6] sm:$0x1] %v708_v8 }
 0x241   :  { %856 = shalt.err (!%p853_p9)
}
 0x242   :  { %720 = dma.vmem_to_hbm [thread:$0]  %s718_s20, 16, %s1161_s7, [#allocation5]  }
 0x243   :  { %867 = dma.done.wait [#allocation5], 16  }
 0x244   :  { %868 = vsyncadd [#allocation5], 4294967280 }
 0x245   :  { %724 = vsyncpa [#allocation4], 1 }
 0x246   :  { %725 = vsyncpa [#allocation5], 1 }

</bundles_post_ra>
